<compile_context>
chip_gen: v6e
topology: v6e:2x2x1
jax: 0.10.0
libtpu: 0.0.40
codegen_flags: <defaults>
</compile_context>

<pallas_src>
import jax
import jax.numpy as jnp
from jax.experimental import pallas as pl
from jax.experimental.pallas import tpu as pltpu


def se_kernel(x_ref, w1t_ref, w2t_ref, o_ref):
    # x_ref : (Nb, C, HWp)        input slab (native dtype)
    # w1t_ref: (C, Cr)            fc1 weight, transposed, pre-scaled by 1/HW
    # w2t_ref: (Cr, C)            fc2 weight, transposed
    # o_ref : (Nb, C, HWp)
    x = x_ref[...]                                              # native dtype
    # Global average pool == sum (1/HW folded into w1t).  f32 accumulation.
    pooled = jnp.sum(x.astype(jnp.float32), axis=-1)            # (Nb, C)

    cdt = w1t_ref.dtype
    h = jnp.dot(pooled.astype(cdt), w1t_ref[...],
                preferred_element_type=jnp.float32)             # (Nb, Cr) fc1
    h = jnp.maximum(h, 0.0)                                     # ReLU
    s = jnp.dot(h.astype(w2t_ref.dtype), w2t_ref[...],
                preferred_element_type=jnp.float32)             # (Nb, C)  fc2
    s = jax.nn.sigmoid(s)                                       # Sigmoid

    # Broadcast multiply in the native dtype (only full-slab VPU op).
    o_ref[...] = (x * s.astype(x.dtype)[:, :, None]).astype(o_ref.dtype)


def _pick_nb(n, c, hw, itemsize, vmem_budget_bytes=8 << 20, min_grid_steps=2):
    """Largest batch-block Nb (divisor of n) whose double-buffered in+out slabs
    fit the VMEM budget, preferring >= min_grid_steps grid steps (megacore)."""
    divisors = [d for d in range(1, n + 1) if n % d == 0]
    feasible = [d for d in divisors if 4 * d * c * hw * itemsize <= vmem_budget_bytes]
    if not feasible:
        return 1
    multi_step = [d for d in feasible if n // d >= min(min_grid_steps, n)]
    return max(multi_step) if multi_step else max(feasible)


def se_module(x_nchw, w1, w2):
    """x_nchw: (N, C, H, W); w1: (C//r, C); w2: (C, C//r) -> (N, C, H, W)."""
    N, C, H, W = x_nchw.shape
    HW = H * W
    Cr = w1.shape[0]

    x = x_nchw.reshape(N, C, HW)

    # Lane-dense output: pad the spatial axis to a multiple of 128 if needed.
    # Zero padding does not change the pooled sum, and padded lanes are
    # discarded after the call.
    HWp = ((HW + 127) // 128) * 128
    if HWp != HW:
        x = jnp.pad(x, ((0, 0), (0, 0), (0, HWp - HW)))

    # Fold the 1/HW of AdaptiveAvgPool2d(1) into fc1 (linear), pre-transpose
    # both weights so the kernel never transposes per step.
    w1t = (w1 * (1.0 / HW)).T.astype(w1.dtype)   # (C, Cr)
    w2t = w2.T                                   # (Cr, C)

    Nb = _pick_nb(N, C, HWp, x.dtype.itemsize)
    grid = (N // Nb,)

    out = pl.pallas_call(
        se_kernel,
        out_shape=jax.ShapeDtypeStruct((N, C, HWp), x_nchw.dtype),
        grid_spec=pltpu.PrefetchScalarGridSpec(
            num_scalar_prefetch=0,
            grid=grid,
            in_specs=[
                pl.BlockSpec((Nb, C, HWp), lambda n: (n, 0, 0)),
                pl.BlockSpec((C, Cr), lambda n: (0, 0)),
                pl.BlockSpec((Cr, C), lambda n: (0, 0)),
            ],
            out_specs=pl.BlockSpec((Nb, C, HWp), lambda n: (n, 0, 0)),
        ),
        compiler_params=pltpu.CompilerParams(
            dimension_semantics=("parallel",),
            vmem_limit_bytes=32 << 20,
        ),
    )(x, w1t, w2t)

    if HWp != HW:
        out = out[:, :, :HW]
    return out.reshape(N, C, H, W)


def se_reference(x_nchw, w1, w2):
    # Pure-JAX reference mirroring the PyTorch forward.
    pooled = jnp.mean(x_nchw, axis=(2, 3))                 # (N, C)
    h = jnp.maximum(pooled @ w1.T, 0.0)                    # (N, Cr)
    s = jax.nn.sigmoid(h @ w2.T)                           # (N, C)
    return x_nchw * s[:, :, None, None]


if __name__ == "__main__":
    # SEModule(channels=4, reduction=2) on a (2, 4, 16, 16) input.
    N, C, H, W = 2, 4, 16, 16
    reduction = 2
    Cr = C // reduction

    key = jax.random.PRNGKey(0)
    kx, k1, k2 = jax.random.split(key, 3)
    x = jax.random.normal(kx, (N, C, H, W), dtype=jnp.float32)
    # Deterministic synthetic weights for the two 1x1 convs (bias=False).
    w1 = jax.random.normal(k1, (Cr, C), dtype=jnp.float32) * 0.5   # fc1 weight (Cr, C, 1, 1) squeezed
    w2 = jax.random.normal(k2, (C, Cr), dtype=jnp.float32) * 0.5   # fc2 weight (C, Cr, 1, 1) squeezed

    out = se_module(x, w1, w2)
    out = jax.block_until_ready(out)

    ref = se_reference(x, w1, w2)
    assert jnp.allclose(out, ref, atol=1e-5, rtol=1e-5), "mismatch vs reference"

    print("KERNEL_OK")
</pallas_src>

<mosaic_0001>
module attributes {stable_mosaic.version = 11 : i64} {
  func.func @se_kernel(%arg0: i32, %arg1: memref<1x4x256xf32, #tpu.memory_space<vmem>>, %arg2: memref<4x2xf32, #tpu.memory_space<vmem>>, %arg3: memref<2x4xf32, #tpu.memory_space<vmem>>, %arg4: memref<1x4x256xf32, #tpu.memory_space<vmem>>) attributes {dimension_semantics = [#tpu.dimension_semantics<parallel>], iteration_bounds = array<i64: 2>, scalar_prefetch = 0 : i64, scratch_operands = 0 : i64, tpu.core_type = #tpu.core_type<tc>, window_params = [{transform_indices = @transform_0, window_bounds = array<i64: 1, 4, 256>}, {pipeline_mode = #tpu.pipeline_mode<synchronous>, transform_indices = @transform_1, window_bounds = array<i64: 4, 2>}, {pipeline_mode = #tpu.pipeline_mode<synchronous>, transform_indices = @transform_2, window_bounds = array<i64: 2, 4>}, {transform_indices = @transform_3, window_bounds = array<i64: 1, 4, 256>}]} {
    %c0 = arith.constant 0 : index
    %c0_0 = arith.constant 0 : index
    %c0_1 = arith.constant 0 : index
    %0 = vector.load %arg1[%c0, %c0_0, %c0_1] : memref<1x4x256xf32, #tpu.memory_space<vmem>>, vector<1x4x256xf32>
    %cst = arith.constant dense<0.000000e+00> : vector<1x4xf32>
    %1 = vector.multi_reduction <add>, %0, %cst [2] : vector<1x4x256xf32> to vector<1x4xf32>
    %c0_2 = arith.constant 0 : index
    %c0_3 = arith.constant 0 : index
    %2 = vector.load %arg2[%c0_2, %c0_3] : memref<4x2xf32, #tpu.memory_space<vmem>>, vector<4x2xf32>
    %cst_4 = arith.constant dense<0.000000e+00> : vector<1x2xf32>
    %3 = tpu.matmul %1, %2, %cst_4 {dimension_numbers = #tpu.dot_dimension_numbers<[1], [0], [0], [1], [0, 0, 1, 1], [], []>} : vector<1x4xf32>, vector<4x2xf32>, vector<1x2xf32> -> vector<1x2xf32>
    %cst_5 = arith.constant 0.000000e+00 : f32
    %4 = vector.broadcast %cst_5 : f32 to vector<1x2xf32>
    %5 = arith.maximumf %3, %4 : vector<1x2xf32>
    %c0_6 = arith.constant 0 : index
    %c0_7 = arith.constant 0 : index
    %6 = vector.load %arg3[%c0_6, %c0_7] : memref<2x4xf32, #tpu.memory_space<vmem>>, vector<2x4xf32>
    %cst_8 = arith.constant dense<0.000000e+00> : vector<1x4xf32>
    %7 = tpu.matmul %5, %6, %cst_8 {dimension_numbers = #tpu.dot_dimension_numbers<[1], [0], [0], [1], [0, 0, 1, 1], [], []>} : vector<1x2xf32>, vector<2x4xf32>, vector<1x4xf32> -> vector<1x4xf32>
    %8 = arith.negf %7 : vector<1x4xf32>
    %9 = math.exp %8 : vector<1x4xf32>
    %cst_9 = arith.constant 1.000000e+00 : f32
    %10 = vector.broadcast %cst_9 : f32 to vector<1x4xf32>
    %11 = arith.addf %10, %9 : vector<1x4xf32>
    %12 = arith.divf %10, %11 : vector<1x4xf32>
    %13 = vector.shape_cast %12 : vector<1x4xf32> to vector<1x4x1xf32>
    %14 = vector.broadcast %13 : vector<1x4x1xf32> to vector<1x4x256xf32>
    %15 = arith.mulf %0, %14 : vector<1x4x256xf32>
    %c0_10 = arith.constant 0 : index
    %c0_11 = arith.constant 0 : index
    %c0_12 = arith.constant 0 : index
    %16 = vector.load %arg4[%c0_10, %c0_11, %c0_12] : memref<1x4x256xf32, #tpu.memory_space<vmem>>, vector<1x4x256xf32>
    tpu.vector_store %arg4[%c0_10, %c0_11, %c0_12], %15 {strides = array<i32>} : memref<1x4x256xf32, #tpu.memory_space<vmem>>, vector<1x4x256xf32>,
    return
  }
  func.func @transform_0(%arg0: i32) -> (i32, i32, i32) {
    %c0_i32 = arith.constant 0 : i32
    %c0_i32_0 = arith.constant 0 : i32
    %c0_i32_1 = arith.constant 0 : i32
    return %arg0, %c0_i32, %c0_i32_0 : i32, i32, i32
  }
  func.func @transform_1(%arg0: i32) -> (i32, i32) {
    %c0_i32 = arith.constant 0 : i32
    %c0_i32_0 = arith.constant 0 : i32
    %c0_i32_1 = arith.constant 0 : i32
    return %c0_i32, %c0_i32_0 : i32, i32
  }
  func.func @transform_2(%arg0: i32) -> (i32, i32) {
    %c0_i32 = arith.constant 0 : i32
    %c0_i32_0 = arith.constant 0 : i32
    %c0_i32_1 = arith.constant 0 : i32
    return %c0_i32, %c0_i32_0 : i32, i32
  }
  func.func @transform_3(%arg0: i32) -> (i32, i32, i32) {
    %c0_i32 = arith.constant 0 : i32
    %c0_i32_0 = arith.constant 0 : i32
    %c0_i32_1 = arith.constant 0 : i32
    return %arg0, %c0_i32, %c0_i32_0 : i32, i32, i32
  }
}

</mosaic_0001>

<bundles_post_ra>
// kernel: tpu_custom_call.1
= control target key start
LH: loop header
LB: loop body
LE: loop exit
PB: predicated region body
PF: predicated region fallthrough
CT: control target
= control target key end

     0   :  { %8 = vsyncpa [#allocation3], 0  ;;  %s829_s0 = inlined_call_operand.hbm [shape: f32[2,4,256], index: 0, kind: input, shape index: {}]   ;;  %s830_s1 = inlined_call_operand.vmem [shape: f32[4,2], index: 1, kind: input, shape index: {}]   ;;  %s831_s2 = inlined_call_operand.vmem [shape: f32[2,4], index: 2, kind: input, shape index: {}]   ;;  %s832_s3 = inlined_call_operand.hbm [shape: f32[2,4,256], index: 3, kind: output, shape index: {}]  }
   0x1   :  { %10 = vsyncpa [#allocation3 + $0x1], 0 }
   0x2   :  { %11 = vsyncpa [#allocation4], 0 }
   0x3   :  { %13 = vsyncpa [#allocation4 + $0x1], 0  ;;  %s678_s12 = smov 0   ;;  %s680_s13 = smov 0  }
   0x4   :  { %s682_s14 = smov 0   ;;  %s684_s15 = smov 0  }
   0x5 LB: > { %s699_s16 = sadd.s32 4294967295, %s651_s15   ;;  %s470_s17 = sadd.s32 4294967294, %s651_s15   ;;  %s651_s15 = sphi %s684_s15, %s849_s15   ;;  %s647_s14 = sphi %s682_s14, %s848_s14   ;;  %s643_s13 = sphi %s680_s13, %s847_s13   ;;  %s639_s12 = sphi %s678_s12, %s846_s12  }
   0x6   : > { %s703_s18 = sadd.s32 1, %s651_s15   ;;  %s26_s19 = sadd.s32 1, %s647_s14 }
   0x7   : > { %s23_s20 = ssub.s32 %s651_s15, %s703_s18  ;;  %p33_p0 = scmp.ne.s32.totalorder %s647_s14, %s643_s13 }
   0x8   : > { %p24_p1 = scmp.eq.s32.totalorder %s23_s20, 0  ;;  %p34_p2 = scmp.eq.s32.totalorder %s651_s15, 0 }
   0x9   : > { %p39_p3 = scmp.ne.s32.totalorder %s643_s13, %s639_s12  ;;  %p40_p4 = scmp.eq.s32.totalorder %s699_s16, 0 }
   0xa   : > { %s715_s21 = scalar_select %p24_p1, %s647_s14, %s26_s19  }
   0xb   : > { %p717_p5 = por %p34_p2, %p33_p0  ;;  %p721_p6 = por %p40_p4, %p39_p3 }
   0xc   : > { %p105_p7 = scmp.eq.s32.totalorder %s699_s16, 1  ;;  %p111_p8 = scmp.eq.s32.totalorder %s470_s17, 1 }
   0xd   : > { %s836_s23 = scalar_select %p721_p6, 1, 0 }
   0xe   : > { %p517_p10 = scmp.lt.s32.totalorder %s651_s15, 2  ;;  %p728_p11 = por %p105_p7, %p33_p0 }
   0xf   : > { %p732_p12 = por %p111_p8, %p39_p3  ;;  %s137_s26 = sand.u32 1, %s647_s14  }
  0x10   : > { %s837_s24 = scalar_select %p728_p11, 1, 0 }
  0x11   : > { %s838_s25 = scalar_select %p732_p12, 1, 0 }
  0x12   : > { %s489_s27 = sshll.u32 %s651_s15, 7  ;;  %s473_s28 = sshll.u32 %s137_s26, 3 }
  0x13   : > { %s741_s4 = scalar_lea.hbm %s829_s0, %s489_s27  ;;  %s141_s5 = scalar_lea.vmem [#allocation2], %s473_s28 }
  0x14   : > { %s149_s6 = sshll.u32 %s141_s5, 4  ;;  %p745_p13 = pnand %p517_p10, %p717_p5  ;;  %s749_s6 = int_to_ptr.vmem [resolvable:$true] %s149_s6 }
  0x15   : > { %s138_s8 = scalar_lea.sflag [#allocation3], %s137_s26  ;;  %s559_s9 = scalar_lea.hbm %s741_s4, 128 }
  0x16   : > { %p560_p2 = scmp.ne.s32.totalorder %s741_s4, %s559_s9  ;;  %p561_p3 = pneg %p745_p13 }
  0x17   : > { %s564_s17 = scalar_lea.hbm %s829_s0, 256  ;;  %p565_p5 = scmp.lt.s32.totalorder %s741_s4, %s829_s0 }
  0x18   : > { %p562_p4 = pnand %p561_p3, %p560_p2  ;;  %p566_p8 = scmp.lt.s32.totalorder %s564_s17, %s559_s9 }
  0x1a   : > { %p563_p7 = pneg %p562_p4  ;;  %p567_p10 = por %p566_p8, %p565_p5 }
  0x1c   : > { %p568_p9 = pnand %p567_p10, %p563_p7 }
  0x1e   : > { %571 = shalt.err (!%p568_p9)
}
  0x1f   : > { %s572_s22 = scalar_lea.vmem %s749_s6, 128  ;;  %s653_s26 = smov [#allocation2]  }
  0x20   : > { %p573_p0 = scmp.ne.s32.totalorder %s749_s6, %s572_s22  ;;  %s577_s27 = sshll.u32 %s653_s26, 4  ;;  %s578_s27 = int_to_ptr.vmem [resolvable:$false] %s577_s27 }
  0x21   : > { %s579_s28 = scalar_lea.vmem %s578_s27, 256  ;;  %p580_p4 = scmp.lt.s32.totalorder %s749_s6, %s578_s27 }
  0x22   : > { %p575_p1 = pnand %p573_p0, %p561_p3  ;;  %p581_p12 = scmp.lt.s32.totalorder %s579_s28, %s572_s22 }
  0x24   : > { %p576_p2 = pneg %p575_p1  ;;  %p582_p11 = por %p581_p12, %p580_p4 }
  0x26   : > { %p583_p6 = pnand %p582_p11, %p576_p2 }
  0x28   : > { %586 = shalt.err (!%p583_p6)
}
  0x29   : > { %512 = dma.hbm_to_vmem [thread:$0]  (!%p745_p13), %s741_s4, 128, %s749_s6, %s138_s8  }
  0x2a   : > { %p840_p9 = scmp.lt.s32.totalorder %s651_s15, 3  ;;  %p841_p7 = scmp.ge.s32.totalorder %s651_s15, 1 }
  0x2c   : > { %p155_p0 = pnand %p841_p7, %p840_p9 }
  0x2d   : > { %s776_s29 = sand.u32 (!%p155_p0), 1, %s643_s13   ;;  %p842_p6 = scmp.ne.s32.totalorder (!%p155_p0), %s836_s23, 0 }
  0x2e   : > { %158 = sbr.rel (%p155_p0) target bundleno = 752 (0x2f0), region = 32  ;;  %s477_s30 = sshll.u32 (!%p155_p0), %s776_s29, 3 }
  0x2f   : > { %s161_s5 = scalar_lea.sflag (!%p155_p0), [#allocation3], %s776_s29  ;;  %s164_s7 = scalar_lea.vmem (!%p155_p0), [#allocation2], %s477_s30 }
  0x33   : > { %630 = dma.done.wait (%p842_p6), %s161_s5, 128  }
  0x34   : > { %632 = vsyncadd (%p842_p6), %s161_s5, 4294967168  ;;  %vm191_vm0 = vcmask 1043456   ;;  %v187_v0 = vld [vmem:[%s164_s7] sm:$0xff]  ;;  %v654_v5 = vmov 0.0   ;;  %vm655_vm1 = vmmov 0   ;;  %v199_v7 = vlaneseq  ;;  %s490_s9 = sshll.u32 %s699_s16, 7 }
  0x35   : > { %v189_v1 = vcombine.high %v187_v0, %v187_v0  ;;  %v192_v2 = vsel %vm191_vm0, %v187_v0, 0.0  ;;  %495 = vmatprep.subr.mxu0 %v654_v5  ;;  %v197_v6 = vld [vmem:[%s830_s1] sm:$0xf]  ;;  %500 = vmatprep.subr.mxu1 %v654_v5  ;;  %vm205_vm2 = vcmask 31744   ;;  %vm287_vm3 = vcmask 1041408   ;;  %s186_s10 = scalar_lea.vmem [#allocation5], %s477_s30  ;;  %s398_s20 = scalar_lea.hbm %s832_s3, %s490_s9 }
  0x36   : > { %496 = vmatpush3.msk.msra.mxu0 %vm191_vm0, %v197_v6  ;;  %497 = vmatprep.mubr.msk.f32.mxu0 %vm655_vm1, %v654_v5  ;;  %v200_v8 = vand.u32 127, %v199_v7  ;;  %v202_v9 = vshrl.u32 %v199_v7, 7  ;;  %v282_v13 = vld [vmem:[%s831_s2] sm:$0x3]  ;;  %vm283_vm4 = vcmask 15360   ;;  %s400_s11 = sshll.u32 %s186_s10, 4  ;;  %s401_s11 = int_to_ptr.vmem [resolvable:$true] %s400_s11 }
  0x37   : > { %v193_v3 = vsel %vm191_vm0, %v189_v1, 0.0  ;;  %502 = vmatprep.mubr.msk.f32.mxu1 %vm655_vm1, %v654_v5  ;;  %501 = vmatpush3.msk.msra.mxu1 %vm287_vm3, %v282_v13  ;;  %v656_v25 = vmov 839922192   ;;  %s386_s22 = scalar_lea.sflag [#allocation4], %s776_s29  ;;  %s587_s26 = scalar_lea.vmem %s401_s11, 128 }
  0x38   : > { %v194_v4 = vadd.f32 %v193_v3, %v192_v2  ;;  %v203_v10 = vsub.s32 %v200_v8, %v202_v9  ;;  %v369_v22 = vsub.s32 0, %v202_v9  ;;  %v376_v26 = vunpack.c.l.s4 %v656_v25  ;;  %p588_p11 = scmp.ne.s32.totalorder %s401_s11, %s587_s26  ;;  %p843_p12 = scmp.ne.s32.totalorder %s837_s24, 0 }
  0x39   : > { %s657_s27 = smov [#allocation5]  }
  0x3a   : > { %195 = vadd.xlane.f32.xlu0 %v194_v4  ;;  %v377_v27 = vunpack.c.0.s8 %v376_v26  ;;  %p589_p13 = pnand %p588_p11, %p843_p12  ;;  %s591_s28 = sshll.u32 %s657_s27, 4  ;;  %s592_s28 = int_to_ptr.vmem [resolvable:$false] %s591_s28 }
  0x3b   : > { %s593_s16 = scalar_lea.vmem %s592_s28, 256  ;;  %p594_p3 = scmp.lt.s32.totalorder %s401_s11, %s592_s28 }
  0x3c   : > { %v380_v28 = vsub.s32 %v377_v27, %v202_v9  ;;  %p590_p1 = pneg %p589_p13  ;;  %p595_p5 = scmp.lt.s32.totalorder %s593_s16, %s587_s26 }
  0x3e   : > { %p596_p8 = por %p595_p5, %p594_p3 }
  0x40   : > { %p597_p10 = pnand %p596_p8, %p590_p1 }
  0xc3   : > { %v196_v11 = vpop.xlane.xlu0 %195 }
  0xc4   : > { %v204_v12 = vrot.slane %v196_v11, %v203_v10 }
  0xc6   : > { %498 = vmatmul.mubr.msk.f32.vlgmr.msra.gmra.mxu0 %vm205_vm2, %v204_v12 }
 0x186   : > { %v277_v14 = vpop.f32.mrf.mxu0 }
 0x187   : > { %v281_v15 = vmax.f32 %v277_v14, 0.0 }
 0x188   : > { %v499_v16 = vpop.f32.mrf.mxu0 }
 0x189   : > { %503 = vmatmul.mubr.msk.f32.vlgmr.msra.gmra.mxu1 %vm283_vm4, %v281_v15 }
 0x249   : > { %v357_v17 = vpop.f32.mrf.mxu1 }
 0x24a   : > { %v483_v18 = vmul.f32 -1.442695, %v357_v17 }
 0x24b   : > { %v504_v19 = vpop.f32.mrf.mxu1 }
 0x24c   : > { %555 = vpow2.f32 %v483_v18 }
 0x259   : > { %v556_v20 = vpop.eup %555 }
 0x25a   : > { %v364_v21 = vadd.f32 1.0, %v556_v20 }
 0x25c   : > { %557 = vrcp.f32 %v364_v21 }
 0x269   : > { %v558_v23 = vpop.eup %557 }
 0x26a   : > { %v370_v24 = vrot.slane %v558_v23, %v369_v22 }
 0x26c   : > { %372 = vbcast.lane.b32.xlu0 %v370_v24, 256 }
 0x2de   : > { %v373_v29 = vpop.permute.xlu0 %372 }
 0x2df   : > { %v381_v30 = vrot.slane %v373_v29, %v380_v28 }
 0x2e1   : > { %v383_v31 = vmul.f32 %v381_v30, %v187_v0 }
 0x2e3   : > { %384 = vst [vmem:[%s186_s10] sm:$0xff] %v383_v31 }
 0x2e4   : > { %600 = shalt.err (!%p597_p10)
}
 0x2e5   : > { %s601_s30 = scalar_lea.hbm %s398_s20, 128  ;;  %s605_s7 = scalar_lea.hbm %s832_s3, 256 }
 0x2e6   : > { %p602_p2 = scmp.ne.s32.totalorder %s398_s20, %s601_s30  ;;  %p606_p7 = scmp.lt.s32.totalorder %s398_s20, %s832_s3 }
 0x2e7   : > { %p607_p0 = scmp.lt.s32.totalorder %s605_s7, %s601_s30 }
 0x2e8   : > { %p603_p4 = pnand %p602_p2, %p843_p12 }
 0x2e9   : > { %p608_p6 = por %p607_p0, %p606_p7 }
 0x2ea   : > { %p604_p9 = pneg %p603_p4 }
 0x2ec   : > { %p609_p11 = pnand %p608_p6, %p604_p9 }
 0x2ee   : > { %612 = shalt.err (!%p609_p11)
}
 0x2ef   : > { %507 = dma.vmem_to_hbm [thread:$0]  (%p843_p12), %s401_s11, 128, %s398_s20, %s386_s22  }
 0x2f0 PF: > { %s412_s23 = sand.u32 1, %s639_s12   ;;  %p844_p13 = scmp.ne.s32.totalorder %s838_s25, 0 }
 0x2f1   : > { %p845_p1 = scmp.ge.s32.totalorder %s651_s15, 2  ;;  %s413_s8 = scalar_lea.sflag [#allocation4], %s412_s23 }
 0x2f3   : > { %p514_p3 = pnand %p845_p1, %p844_p13 }
 0x2f5   : > { %p515_p5 = pneg %p514_p3 }
 0x2f7   : > { %634 = dma.done.wait (%p515_p5), %s413_s8, 128  }
 0x2f8   : > { %636 = vsyncadd (%p515_p5), %s413_s8, 4294967168  ;;  %p16_p8 = scmp.ge.s32.totalorder %s703_s18, 4   ;;  %s846_s12 = smov %s643_s13 }
 0x2f9   : > { %s847_s13 = smov %s647_s14  ;;  %s848_s14 = smov %s715_s21 }
 0x2fa   : > { %s849_s15 = smov %s703_s18  ;;  %18 = sbr.rel (!%p16_p8) target bundleno = 5 (0x5), region = 77 }
 0x2ff   :  { %418 = vsyncpa [#allocation3], 1 }
 0x300   :  { %420 = vsyncpa [#allocation3 + $0x1], 1 }
 0x301   :  { %421 = vsyncpa [#allocation4], 1 }
 0x302   :  { %423 = vsyncpa [#allocation4 + $0x1], 1 }

</bundles_post_ra>
